<compile_context>
chip_gen: v7x
topology: tpu7x:2x2x1
jax: 0.10.0
libtpu: 0.0.40
codegen_flags: <defaults>
</compile_context>

<pallas_src>
import jax
import jax.numpy as jnp
from jax.experimental import pallas as pl
from jax.experimental.pallas import tpu as pltpu

SUBLANE = 8  # f32 sublane granularity for the second-to-last block dim


def _round_up(n: int, m: int) -> int:
    return pl.cdiv(n, m) * m


def qnet_kernel(x_ref, w1_ref, b1_ref, w2_ref, b2_ref, out_ref):
    # Hidden layer: (TB, IN) @ (IN, HID) on the MXU, f32 accumulate,
    # then bias + ReLU on the f32 accumulator (VPU).
    h = jnp.dot(x_ref[...], w1_ref[...], preferred_element_type=jnp.float32)
    h = jnp.maximum(h + b1_ref[...], 0.0)            # b1 is (1, HID) -> broadcasts
    # Output layer: (TB, HID) @ (HID, OUT), bias add, narrow store.
    y = jnp.dot(h, w2_ref[...], preferred_element_type=jnp.float32)
    out_ref[...] = (y + b2_ref[...]).astype(out_ref.dtype)


def prepare_params(w1, b1, w2, b2):
    """One-time parameter prep (model build time): biases become 2-D rows so the
    kernel's broadcast is layout-trivial. No per-call work remains."""
    return (w1, b1.reshape(1, -1), w2, b2.reshape(1, -1))


def linear_qnet_forward(x, params, *, num_batch_tiles: int = 2):
    """Fused Pallas forward pass.

    x      : (batch, in_features)  f32
    params : output of prepare_params(w1, b1, w2, b2)
    returns (batch, out_features)  f32
    """
    w1, b1_2d, w2, b2_2d = params
    batch, in_features = x.shape
    hidden = w1.shape[1]
    out_features = w2.shape[1]

    # Batch tiling: at most `num_batch_tiles` grid steps (2 keeps both v7x
    # TensorCores busy; costs one ~0.35us step on single-TC chips). Tiles round
    # to 256 rows for large batches (full-height v6e/v7x MXU pushes), else 8.
    tiles = max(1, num_batch_tiles)
    rows_per_tile = pl.cdiv(batch, tiles)
    granularity = 256 if rows_per_tile >= 256 else SUBLANE
    tb = _round_up(rows_per_tile, granularity)
    batch_p = _round_up(batch, tb)
    num_tiles = batch_p // tb

    # Only the batch axis ever needs padding (and only if not tile-aligned).
    if batch_p != batch:
        x = jnp.pad(x, ((0, batch_p - batch), (0, 0)))

    y = pl.pallas_call(
        qnet_kernel,
        out_shape=jax.ShapeDtypeStruct((batch_p, out_features), jnp.float32),
        grid=(num_tiles,),
        in_specs=[
            pl.BlockSpec((tb, in_features), lambda i: (i, 0)),        # x: tiled over batch
            pl.BlockSpec((in_features, hidden), lambda i: (0, 0)),    # W1: VMEM-resident
            pl.BlockSpec((1, hidden), lambda i: (0, 0)),              # b1: VMEM-resident
            pl.BlockSpec((hidden, out_features), lambda i: (0, 0)),   # W2: VMEM-resident
            pl.BlockSpec((1, out_features), lambda i: (0, 0)),        # b2: VMEM-resident
        ],
        out_specs=pl.BlockSpec((tb, out_features), lambda i: (i, 0)),
        compiler_params=pltpu.CompilerParams(
            dimension_semantics=("parallel",),
        ),
    )(x, w1, b1_2d, w2, b2_2d)

    return y if batch_p == batch else y[:batch]


def init_linear(key, fan_in, fan_out):
    """Deterministic init mimicking PyTorch nn.Linear default:
    U(-1/sqrt(fan_in), 1/sqrt(fan_in)) for both weight and bias.
    Stored as (in, out) so the kernel computes x @ W directly."""
    kw, kb = jax.random.split(key)
    bound = 1.0 / jnp.sqrt(jnp.float32(fan_in))
    w = jax.random.uniform(kw, (fan_in, fan_out), jnp.float32, -bound, bound)
    b = jax.random.uniform(kb, (fan_out,), jnp.float32, -bound, bound)
    return w, b


if __name__ == "__main__":
    # Snake-game Q-net shapes (11 -> hidden -> 3); batch large enough to
    # exercise the 2-tile batch grid yet still small.
    batch, input_size, hidden_size, output_size = 256, 11, 32, 3

    root = jax.random.PRNGKey(0)
    k_x, k_l1, k_l2 = jax.random.split(root, 3)

    x = jax.random.normal(k_x, (batch, input_size), jnp.float32)
    w1, b1 = init_linear(k_l1, input_size, hidden_size)
    w2, b2 = init_linear(k_l2, hidden_size, output_size)

    params = prepare_params(w1, b1, w2, b2)   # hoisted out of the forward path

    y = linear_qnet_forward(x, params)
    y = jax.block_until_ready(y)

    # Pure-JAX reference of the same forward semantics.
    h_ref = jnp.maximum(x @ w1 + b1, 0.0)
    y_ref = h_ref @ w2 + b2
    assert y.shape == (batch, output_size)
    assert jnp.allclose(y, y_ref, atol=1e-5, rtol=1e-5), "mismatch vs reference"

    # TODO(synk): Linear_QNet.save() (torch.save of state_dict to ./model) is
    # file I/O, not forward compute; intentionally not implemented here.

    print("KERNEL_OK")
</pallas_src>

<mosaic_0001>
module attributes {stable_mosaic.version = 11 : i64} {
  func.func @qnet_kernel(%arg0: i32, %arg1: memref<128x11xf32, #tpu.memory_space<vmem>>, %arg2: memref<11x32xf32, #tpu.memory_space<vmem>>, %arg3: memref<1x32xf32, #tpu.memory_space<vmem>>, %arg4: memref<32x3xf32, #tpu.memory_space<vmem>>, %arg5: memref<1x3xf32, #tpu.memory_space<vmem>>, %arg6: memref<128x3xf32, #tpu.memory_space<vmem>>) attributes {dimension_semantics = [#tpu.dimension_semantics<parallel>], iteration_bounds = array<i64: 2>, scalar_prefetch = 0 : i64, scratch_operands = 0 : i64, tpu.core_type = #tpu.core_type<tc>, window_params = [{transform_indices = @transform_0, window_bounds = array<i64: 128, 11>}, {pipeline_mode = #tpu.pipeline_mode<synchronous>, transform_indices = @transform_1, window_bounds = array<i64: 11, 32>}, {pipeline_mode = #tpu.pipeline_mode<synchronous>, transform_indices = @transform_2, window_bounds = array<i64: 1, 32>}, {pipeline_mode = #tpu.pipeline_mode<synchronous>, transform_indices = @transform_3, window_bounds = array<i64: 32, 3>}, {pipeline_mode = #tpu.pipeline_mode<synchronous>, transform_indices = @transform_4, window_bounds = array<i64: 1, 3>}, {transform_indices = @transform_5, window_bounds = array<i64: 128, 3>}]} {
    %c0 = arith.constant 0 : index
    %c0_0 = arith.constant 0 : index
    %0 = vector.load %arg1[%c0, %c0_0] : memref<128x11xf32, #tpu.memory_space<vmem>>, vector<128x11xf32>
    %c0_1 = arith.constant 0 : index
    %c0_2 = arith.constant 0 : index
    %1 = vector.load %arg2[%c0_1, %c0_2] : memref<11x32xf32, #tpu.memory_space<vmem>>, vector<11x32xf32>
    %cst = arith.constant dense<0.000000e+00> : vector<128x32xf32>
    %2 = tpu.matmul %0, %1, %cst {dimension_numbers = #tpu.dot_dimension_numbers<[1], [0], [0], [1], [0, 0, 1, 1], [], []>} : vector<128x11xf32>, vector<11x32xf32>, vector<128x32xf32> -> vector<128x32xf32>
    %c0_3 = arith.constant 0 : index
    %c0_4 = arith.constant 0 : index
    %3 = vector.load %arg3[%c0_3, %c0_4] : memref<1x32xf32, #tpu.memory_space<vmem>>, vector<1x32xf32>
    %4 = vector.broadcast %3 : vector<1x32xf32> to vector<128x32xf32>
    %5 = arith.addf %2, %4 : vector<128x32xf32>
    %cst_5 = arith.constant 0.000000e+00 : f32
    %6 = vector.broadcast %cst_5 : f32 to vector<128x32xf32>
    %7 = arith.maximumf %5, %6 : vector<128x32xf32>
    %c0_6 = arith.constant 0 : index
    %c0_7 = arith.constant 0 : index
    %8 = vector.load %arg4[%c0_6, %c0_7] : memref<32x3xf32, #tpu.memory_space<vmem>>, vector<32x3xf32>
    %cst_8 = arith.constant dense<0.000000e+00> : vector<128x3xf32>
    %9 = tpu.matmul %7, %8, %cst_8 {dimension_numbers = #tpu.dot_dimension_numbers<[1], [0], [0], [1], [0, 0, 1, 1], [], []>} : vector<128x32xf32>, vector<32x3xf32>, vector<128x3xf32> -> vector<128x3xf32>
    %c0_9 = arith.constant 0 : index
    %c0_10 = arith.constant 0 : index
    %10 = vector.load %arg5[%c0_9, %c0_10] : memref<1x3xf32, #tpu.memory_space<vmem>>, vector<1x3xf32>
    %11 = vector.broadcast %10 : vector<1x3xf32> to vector<128x3xf32>
    %12 = arith.addf %9, %11 : vector<128x3xf32>
    %c0_11 = arith.constant 0 : index
    %c0_12 = arith.constant 0 : index
    %13 = vector.load %arg6[%c0_11, %c0_12] : memref<128x3xf32, #tpu.memory_space<vmem>>, vector<128x3xf32>
    tpu.vector_store %arg6[%c0_11, %c0_12], %12 {strides = array<i32>} : memref<128x3xf32, #tpu.memory_space<vmem>>, vector<128x3xf32>,
    return
  }
  func.func @transform_0(%arg0: i32) -> (i32, i32) {
    %c0_i32 = arith.constant 0 : i32
    %c0_i32_0 = arith.constant 0 : i32
    return %arg0, %c0_i32 : i32, i32
  }
  func.func @transform_1(%arg0: i32) -> (i32, i32) {
    %c0_i32 = arith.constant 0 : i32
    %c0_i32_0 = arith.constant 0 : i32
    %c0_i32_1 = arith.constant 0 : i32
    return %c0_i32, %c0_i32_0 : i32, i32
  }
  func.func @transform_2(%arg0: i32) -> (i32, i32) {
    %c0_i32 = arith.constant 0 : i32
    %c0_i32_0 = arith.constant 0 : i32
    %c0_i32_1 = arith.constant 0 : i32
    return %c0_i32, %c0_i32_0 : i32, i32
  }
  func.func @transform_3(%arg0: i32) -> (i32, i32) {
    %c0_i32 = arith.constant 0 : i32
    %c0_i32_0 = arith.constant 0 : i32
    %c0_i32_1 = arith.constant 0 : i32
    return %c0_i32, %c0_i32_0 : i32, i32
  }
  func.func @transform_4(%arg0: i32) -> (i32, i32) {
    %c0_i32 = arith.constant 0 : i32
    %c0_i32_0 = arith.constant 0 : i32
    %c0_i32_1 = arith.constant 0 : i32
    return %c0_i32, %c0_i32_0 : i32, i32
  }
  func.func @transform_5(%arg0: i32) -> (i32, i32) {
    %c0_i32 = arith.constant 0 : i32
    %c0_i32_0 = arith.constant 0 : i32
    return %arg0, %c0_i32 : i32, i32
  }
}

</mosaic_0001>

<bundles_post_ra>
// kernel: tpu_custom_call.1
= control target key start
LH: loop header
LB: loop body
LE: loop exit
PB: predicated region body
PF: predicated region fallthrough
CT: control target
= control target key end

     0   :  { %s951_s18 = smov 0   ;;  %s1083_s0 = inlined_call_operand.vmem [shape: f32[256,11], index: 0, kind: input, shape index: {}]   ;;  %s1084_s1 = inlined_call_operand.vmem [shape: f32[11,32], index: 1, kind: input, shape index: {}]   ;;  %s1085_s2 = inlined_call_operand.vmem [shape: f32[1,32], index: 2, kind: input, shape index: {}]   ;;  %s1086_s3 = inlined_call_operand.vmem [shape: f32[32,3], index: 3, kind: input, shape index: {}]   ;;  %s1087_s4 = inlined_call_operand.vmem [shape: f32[1,3], index: 4, kind: input, shape index: {}]   ;;  %s1088_s5 = inlined_call_operand.vmem [shape: f32[256,3], index: 5, kind: output, shape index: {}]  }
   0x1 LB: > { %s745_s19 = sadd.s32 4294967295, %s918_s18   ;;  %p749_p0 = scmp.ge.s32.totalorder %s918_s18, 1  ;;  %s918_s18 = sphi %s951_s18, %s15_s18  }
   0x2   : > { %p188_p1 = scmp.lt.s32.totalorder %s918_s18, 3 }
   0x4   : > { %p189_p2 = pnand %p749_p0, %p188_p1 }
   0x5   : > { %v244_v0 = vld [vmem:[%s1084_s1] sm:$0xff] (!%p189_p2)  ;;  %v245_v1 = vld [vmem:[%s1084_s1 + $0x8] sm:$0x7] (!%p189_p2)  ;;  %vm302_vm0 = vcmask (!%p189_p2), 1042432   ;;  %s750_s24 = sshll.u32 (!%p189_p2), %s745_s19, 4  ;;  %vm920_vm1 = vmmov (!%p189_p2), 1  }
   0x6   : > { %192 = sbr.rel (%p189_p2) target bundleno = 480 (0x1e0), region = 40  ;;  %v889_v2 = vpack.c.bf16 (!%p189_p2), %v245_v1, %v244_v0  ;;  %vm890_vm2 = vmpackc.low (!%p189_p2), %vm302_vm0, %vm920_vm1  ;;  %p217_p3 = scmp.lt.s32.totalorder (!%p189_p2), %s750_s24, 31  ;;  %v467_v3 = vld [vmem:[%s1086_s3] sm:$0xff] (!%p189_p2)  ;;  %v468_v4 = vld [vmem:[%s1086_s3 + $0x8] sm:$0xff] (!%p189_p2)  ;;  %vm253_vm3 = vcmask (!%p189_p2), 89088   ;;  %vm478_vm4 = vcmask (!%p189_p2), 261120  }
   0x7   : > { %v895_v5 = vpack.c.bf16 (!%p189_p2), %v468_v4, %v467_v3  ;;  %v469_v22 = vld [vmem:[%s1086_s3 + $0x10] sm:$0xff] (!%p189_p2)  ;;  %v470_v23 = vld [vmem:[%s1086_s3 + $0x18] sm:$0xff] (!%p189_p2)  ;;  %v754_v25 = vld [vmem:[%s1085_s2] ss:$0 sm:$0xff] (!%p189_p2)  ;;  %vm672_vm5 = vcmask (!%p189_p2), 23552  }
   0x8   : > { %891 = vmatprep.subr.msk.bf16.mxu0 (!%p189_p2), %vm890_vm2, %v889_v2  ;;  %v899_v24 = vpack.c.bf16 (!%p189_p2), %v470_v23, %v469_v22 }
   0x9   : > { %894 = vmatpush3.bf16.msk.msra.mxu0 (!%p189_p2), %vm890_vm2, %v889_v2  ;;  %896 = vmatprep.subr.bf16.mxu1 (!%p189_p2), %v895_v5 }
   0xa   : > { %898 = vmatpush3.bf16.msra.mxu1 (!%p189_p2), %v895_v5 }
   0xb   : > { %900 = vmatprep.subr.bf16.mxu1 (!%p189_p2), %v899_v24 }
   0xd   : > { %s1090_s24 = smov (!%p217_p3, %s750_s24), 31 }
   0xe   : > { %s751_s29 = sshll.u32 %s1090_s24, 3  ;;  %902 = vmatpush3.bf16.msra.mxu1 %v899_v24 }
   0xf   : > { %s979_s7 = scalar_lea.vmem %s1083_s0, %s751_s29  ;;  %s1046_s19 = scalar_lea.vmem %s1088_s5, %s751_s29 }
  0x10   : > { %v228_v6 = vld [vmem:[%s979_s7] sm:$0xff]  ;;  %v229_v7 = vld [vmem:[%s979_s7 + $0x8] sm:$0xff]  ;;  %v230_v8 = vld [vmem:[%s979_s7 + $0x10] sm:$0xff] }
  0x11   : > { %833 = vmatprep.mubr.msk.f32.mxu0 %vm253_vm3, %v228_v6  ;;  %v231_v9 = vld [vmem:[%s979_s7 + $0x18] sm:$0xff]  ;;  %v232_v10 = vld [vmem:[%s979_s7 + $0x20] sm:$0xff]  ;;  %v233_v11 = vld [vmem:[%s979_s7 + $0x28] sm:$0xff] }
  0x12   : > { %834 = vmatmul.mubr.msk.f32.vlgmr.msra.gmra.mrb[0].mxu0 %vm253_vm3, %v229_v7  ;;  %v234_v12 = vld [vmem:[%s979_s7 + $0x30] sm:$0xff]  ;;  %v235_v13 = vld [vmem:[%s979_s7 + $0x38] sm:$0xff]  ;;  %v236_v14 = vld [vmem:[%s979_s7 + $0x40] sm:$0xff] }
  0x13   : > { %836 = vmatprep.mubr.msk.f32.mxu0 %vm253_vm3, %v230_v8  ;;  %v237_v15 = vld [vmem:[%s979_s7 + $0x48] sm:$0xff]  ;;  %v238_v16 = vld [vmem:[%s979_s7 + $0x50] sm:$0xff]  ;;  %v239_v17 = vld [vmem:[%s979_s7 + $0x58] sm:$0xff] }
  0x14   : > { %v240_v18 = vld [vmem:[%s979_s7 + $0x60] sm:$0xff]  ;;  %v241_v19 = vld [vmem:[%s979_s7 + $0x68] sm:$0xff]  ;;  %v242_v20 = vld [vmem:[%s979_s7 + $0x70] sm:$0xff] }
  0x15   : > { %v243_v21 = vld [vmem:[%s979_s7 + $0x78] sm:$0xff] }
  0x16   : > { %837 = vmatmul.mubr.msk.f32.gmra.mrb[2].mxu0 %vm253_vm3, %v231_v9 }
  0x17   : > { %839 = vmatprep.mubr.msk.f32.mxu0 %vm253_vm3, %v232_v10  ;;  %v772_v10 = vld [vmem:[%s1087_s4] ss:$0 sm:$0xff] }
  0x1a   : > { %840 = vmatmul.mubr.msk.f32.gmra.mrb[4].mxu0 %vm253_vm3, %v233_v11 }
  0x1b   : > { %842 = vmatprep.mubr.msk.f32.mxu0 %vm253_vm3, %v234_v12 }
  0x1e   : > { %843 = vmatmul.mubr.msk.f32.gmra.mrb[6].mxu0 %vm253_vm3, %v235_v13 }
  0x1f   : > { %845 = vmatprep.mubr.msk.f32.mxu0 %vm253_vm3, %v236_v14 }
  0x22   : > { %846 = vmatmul.mubr.msk.f32.gmra.mrb[8].mxu0 %vm253_vm3, %v237_v15 }
  0x23   : > { %848 = vmatprep.mubr.msk.f32.mxu0 %vm253_vm3, %v238_v16 }
  0x26   : > { %849 = vmatmul.mubr.msk.f32.gmra.mrb[10].mxu0 %vm253_vm3, %v239_v17 }
  0x27   : > { %851 = vmatprep.mubr.msk.f32.mxu0 %vm253_vm3, %v240_v18 }
  0x2a   : > { %852 = vmatmul.mubr.msk.f32.gmra.mrb[12].mxu0 %vm253_vm3, %v241_v19 }
  0x2b   : > { %854 = vmatprep.mubr.msk.f32.mxu0 %vm253_vm3, %v242_v20 }
  0x2e   : > { %855 = vmatmul.mubr.msk.f32.gmra.mrb[14].mxu0 %vm253_vm3, %v243_v21 }
  0xe5   : > { %v835_v26 = vpop.f32.mrb[0].mxu0 }
  0xe6   : > { %v378_v27 = vadd.f32 %v835_v26, %v754_v25  ;;  %v372_v28 = vpop.f32.mrb[1].mxu0 }
  0xe7   : > { %v373_v29 = vadd.f32 %v754_v25, %v372_v28 }
  0xe8   : > { %v452_v32 = vmax.f32 %v378_v27, 0.0 }
  0xe9   : > { %v451_v30 = vmax.f32 %v373_v29, 0.0  ;;  %v838_v31 = vpop.f32.mrb[2].mxu0 }
  0xea   : > { %v388_v33 = vadd.f32 %v838_v31, %v754_v25  ;;  %v382_v34 = vpop.f32.mrb[3].mxu0 }
  0xeb   : > { %v383_v35 = vadd.f32 %v754_v25, %v382_v34  ;;  %865 = vmatprep.mubr.msk.f32.mxu1 %vm478_vm4, %v451_v30 }
  0xec   : > { %866 = vmatmul.mubr.msk.f32.vlgmr.msra.gmra.mrb[0].mxu1 %vm478_vm4, %v452_v32  ;;  %v454_v38 = vmax.f32 %v388_v33, 0.0 }
  0xed   : > { %v453_v36 = vmax.f32 %v383_v35, 0.0  ;;  %v841_v37 = vpop.f32.mrb[4].mxu0 }
  0xee   : > { %v398_v39 = vadd.f32 %v841_v37, %v754_v25  ;;  %v392_v40 = vpop.f32.mrb[5].mxu0 }
  0xef   : > { %v393_v41 = vadd.f32 %v754_v25, %v392_v40  ;;  %868 = vmatprep.mubr.msk.f32.mxu1 %vm478_vm4, %v453_v36 }
  0xf0   : > { %869 = vmatmul.mubr.msk.f32.gmra.mrb[2].mxu1 %vm478_vm4, %v454_v38  ;;  %v456_v44 = vmax.f32 %v398_v39, 0.0 }
  0xf1   : > { %v455_v42 = vmax.f32 %v393_v41, 0.0  ;;  %v844_v43 = vpop.f32.mrb[6].mxu0 }
  0xf2   : > { %v408_v45 = vadd.f32 %v844_v43, %v754_v25  ;;  %v402_v46 = vpop.f32.mrb[7].mxu0 }
  0xf3   : > { %v403_v47 = vadd.f32 %v754_v25, %v402_v46  ;;  %871 = vmatprep.mubr.msk.f32.mxu1 %vm478_vm4, %v455_v42 }
  0xf4   : > { %872 = vmatmul.mubr.msk.f32.gmra.mrb[4].mxu1 %vm478_vm4, %v456_v44  ;;  %v458_v50 = vmax.f32 %v408_v45, 0.0 }
  0xf5   : > { %v457_v48 = vmax.f32 %v403_v47, 0.0  ;;  %v847_v49 = vpop.f32.mrb[8].mxu0 }
  0xf6   : > { %v418_v51 = vadd.f32 %v847_v49, %v754_v25  ;;  %v412_v52 = vpop.f32.mrb[9].mxu0 }
  0xf7   : > { %v413_v53 = vadd.f32 %v754_v25, %v412_v52  ;;  %874 = vmatprep.mubr.msk.f32.mxu1 %vm478_vm4, %v457_v48 }
  0xf8   : > { %875 = vmatmul.mubr.msk.f32.gmra.mrb[6].mxu1 %vm478_vm4, %v458_v50  ;;  %v460_v56 = vmax.f32 %v418_v51, 0.0 }
  0xf9   : > { %v459_v54 = vmax.f32 %v413_v53, 0.0  ;;  %v850_v55 = vpop.f32.mrb[10].mxu0 }
  0xfa   : > { %v428_v57 = vadd.f32 %v850_v55, %v754_v25  ;;  %v422_v58 = vpop.f32.mrb[11].mxu0 }
  0xfb   : > { %v423_v59 = vadd.f32 %v754_v25, %v422_v58  ;;  %877 = vmatprep.mubr.msk.f32.mxu1 %vm478_vm4, %v459_v54 }
  0xfc   : > { %878 = vmatmul.mubr.msk.f32.gmra.mrb[8].mxu1 %vm478_vm4, %v460_v56  ;;  %v462_v62 = vmax.f32 %v428_v57, 0.0 }
  0xfd   : > { %v461_v60 = vmax.f32 %v423_v59, 0.0  ;;  %v853_v61 = vpop.f32.mrb[12].mxu0 }
  0xfe   : > { %v438_v63 = vadd.f32 %v853_v61, %v754_v25  ;;  %v432_v0 = vpop.f32.mrb[13].mxu0 }
  0xff   : > { %v433_v1 = vadd.f32 %v754_v25, %v432_v0  ;;  %880 = vmatprep.mubr.msk.f32.mxu1 %vm478_vm4, %v461_v60 }
 0x100   : > { %881 = vmatmul.mubr.msk.f32.gmra.mrb[10].mxu1 %vm478_vm4, %v462_v62  ;;  %v464_v4 = vmax.f32 %v438_v63, 0.0 }
 0x101   : > { %v463_v2 = vmax.f32 %v433_v1, 0.0  ;;  %v856_v3 = vpop.f32.mrb[14].mxu0 }
 0x102   : > { %v448_v5 = vadd.f32 %v856_v3, %v754_v25  ;;  %v442_v6 = vpop.f32.mrb[15].mxu0 }
 0x103   : > { %v443_v7 = vadd.f32 %v754_v25, %v442_v6  ;;  %883 = vmatprep.mubr.msk.f32.mxu1 %vm478_vm4, %v463_v2 }
 0x104   : > { %884 = vmatmul.mubr.msk.f32.gmra.mrb[12].mxu1 %vm478_vm4, %v464_v4  ;;  %v466_v9 = vmax.f32 %v448_v5, 0.0 }
 0x105   : > { %v465_v8 = vmax.f32 %v443_v7, 0.0 }
 0x107   : > { %886 = vmatprep.mubr.msk.f32.mxu1 %vm478_vm4, %v465_v8 }
 0x108   : > { %887 = vmatmul.mubr.msk.f32.gmra.mrb[14].mxu1 %vm478_vm4, %v466_v9 }
 0x1bf   : > { %v867_v11 = vpop.f32.mrb[0].mxu1 }
 0x1c0   : > { %v599_v12 = vadd.f32 %v867_v11, %v772_v10  ;;  %v593_v13 = vpop.f32.mrb[1].mxu1 }
 0x1c1   : > { %v594_v14 = vadd.f32 %v772_v10, %v593_v13 }
 0x1c2   : > { %674 = vst.msk [vmem:[%s1046_s19 + $0x8] sm:$0xff] %vm672_vm5, %v599_v12 }
 0x1c3   : > { %673 = vst.msk [vmem:[%s1046_s19] sm:$0xff] %vm672_vm5, %v594_v14  ;;  %v870_v15 = vpop.f32.mrb[2].mxu1 }
 0x1c4   : > { %v609_v16 = vadd.f32 %v870_v15, %v772_v10  ;;  %v603_v17 = vpop.f32.mrb[3].mxu1 }
 0x1c5   : > { %v604_v18 = vadd.f32 %v772_v10, %v603_v17 }
 0x1c6   : > { %676 = vst.msk [vmem:[%s1046_s19 + $0x18] sm:$0xff] %vm672_vm5, %v609_v16 }
 0x1c7   : > { %675 = vst.msk [vmem:[%s1046_s19 + $0x10] sm:$0xff] %vm672_vm5, %v604_v18  ;;  %v873_v19 = vpop.f32.mrb[4].mxu1 }
 0x1c8   : > { %v619_v20 = vadd.f32 %v873_v19, %v772_v10  ;;  %v613_v21 = vpop.f32.mrb[5].mxu1 }
 0x1c9   : > { %v614_v22 = vadd.f32 %v772_v10, %v613_v21 }
 0x1ca   : > { %678 = vst.msk [vmem:[%s1046_s19 + $0x28] sm:$0xff] %vm672_vm5, %v619_v20 }
 0x1cb   : > { %677 = vst.msk [vmem:[%s1046_s19 + $0x20] sm:$0xff] %vm672_vm5, %v614_v22  ;;  %v876_v23 = vpop.f32.mrb[6].mxu1 }
 0x1cc   : > { %v629_v24 = vadd.f32 %v876_v23, %v772_v10  ;;  %v623_v25 = vpop.f32.mrb[7].mxu1 }
 0x1cd   : > { %v624_v26 = vadd.f32 %v772_v10, %v623_v25 }
 0x1ce   : > { %680 = vst.msk [vmem:[%s1046_s19 + $0x38] sm:$0xff] %vm672_vm5, %v629_v24 }
 0x1cf   : > { %679 = vst.msk [vmem:[%s1046_s19 + $0x30] sm:$0xff] %vm672_vm5, %v624_v26  ;;  %v879_v27 = vpop.f32.mrb[8].mxu1 }
 0x1d0   : > { %v639_v28 = vadd.f32 %v879_v27, %v772_v10  ;;  %v633_v29 = vpop.f32.mrb[9].mxu1 }
 0x1d1   : > { %v634_v30 = vadd.f32 %v772_v10, %v633_v29 }
 0x1d2   : > { %682 = vst.msk [vmem:[%s1046_s19 + $0x48] sm:$0xff] %vm672_vm5, %v639_v28 }
 0x1d3   : > { %681 = vst.msk [vmem:[%s1046_s19 + $0x40] sm:$0xff] %vm672_vm5, %v634_v30  ;;  %v882_v31 = vpop.f32.mrb[10].mxu1 }
 0x1d4   : > { %v649_v32 = vadd.f32 %v882_v31, %v772_v10  ;;  %v643_v33 = vpop.f32.mrb[11].mxu1 }
 0x1d5   : > { %v644_v34 = vadd.f32 %v772_v10, %v643_v33 }
 0x1d6   : > { %684 = vst.msk [vmem:[%s1046_s19 + $0x58] sm:$0xff] %vm672_vm5, %v649_v32 }
 0x1d7   : > { %683 = vst.msk [vmem:[%s1046_s19 + $0x50] sm:$0xff] %vm672_vm5, %v644_v34  ;;  %v885_v35 = vpop.f32.mrb[12].mxu1 }
 0x1d8   : > { %v659_v36 = vadd.f32 %v885_v35, %v772_v10  ;;  %v653_v37 = vpop.f32.mrb[13].mxu1 }
 0x1d9   : > { %v654_v38 = vadd.f32 %v772_v10, %v653_v37 }
 0x1da   : > { %686 = vst.msk [vmem:[%s1046_s19 + $0x68] sm:$0xff] %vm672_vm5, %v659_v36 }
 0x1db   : > { %685 = vst.msk [vmem:[%s1046_s19 + $0x60] sm:$0xff] %vm672_vm5, %v654_v38  ;;  %v888_v39 = vpop.f32.mrb[14].mxu1 }
 0x1dc   : > { %v669_v40 = vadd.f32 %v888_v39, %v772_v10  ;;  %v663_v41 = vpop.f32.mrb[15].mxu1 }
 0x1dd   : > { %v664_v42 = vadd.f32 %v772_v10, %v663_v41 }
 0x1de   : > { %688 = vst.msk [vmem:[%s1046_s19 + $0x78] sm:$0xff] %vm672_vm5, %v669_v40 }
 0x1df   : > { %687 = vst.msk [vmem:[%s1046_s19 + $0x70] sm:$0xff] %vm672_vm5, %v664_v42 }
 0x1e0 PF: > { %s15_s18 = sadd.s32 1, %s918_s18  }
 0x1e1   : > { %p12_p4 = scmp.ge.s32.totalorder %s15_s18, 4  }
 0x1e3   :  { %14 = sbr.rel (!%p12_p4) target bundleno = 1 (0x1), region = 70 }

</bundles_post_ra>
